<compile_context>
chip_gen: v5e
topology: v5e:2x2
jax: 0.10.0
libtpu: 0.0.40
codegen_flags: <defaults>
</compile_context>

<pallas_src>
import functools

import jax
import jax.numpy as jnp
from jax.experimental import pallas as pl
from jax.experimental.pallas import tpu as pltpu


# ------------------------- hyper-parameters (synthetic) ----------------------
class HParams:
    nif_sees_f0 = True
    nif_sees_amp = True
    nif_sees_vowel = True
    n_vowel_dims = 2
    nif_depth = 2
    nif_width = 32
    nif_abs_out = True


def nitf_in_dim(hp: HParams, is_vocal: bool = True) -> int:
    d = 1
    if hp.nif_sees_f0:
        d += 1
    if hp.nif_sees_amp:
        d += 1
    if hp.nif_sees_vowel and is_vocal:
        d += hp.n_vowel_dims
    return d


def _round_up(x: int, m: int) -> int:
    return (x + m - 1) // m * m


# ------------------------------ Pallas kernel --------------------------------
def _nitf_kernel(layer_meta, abs_out, chunk, mxu_bf16, x_ref, p_ref, o_ref):
    """One sample tile.

    x_ref: (in_dim, tile_n)  -- samples on the lane axis
    p_ref: (rows, cols)      -- packed params (see pack_nitf_params)
    o_ref: (1, tile_n)       -- lane-dense output
    """
    n_layers = len(layer_meta)
    tile_n = x_ref.shape[-1]
    n_chunks = tile_n // chunk

    # Hoist all parameter loads (and the optional bf16 weight cast) out of the
    # per-chunk loop: p_ref is tiny and VMEM-resident, so these become
    # loop-invariant vregs.
    prepared = []
    for (r0, fi, fo, c0) in layer_meta:
        b = p_ref[r0:r0 + fo, fi:fi + 1]                 # (fo, 1)
        if fo == 1 and fi > 8:
            w = p_ref[c0:c0 + fi, 0:1]                   # (fi, 1) column copy
        else:
            w = p_ref[r0:r0 + fo, 0:fi]                  # (fo, fi)
            if fo > 1 and fi > 8 and mxu_bf16:
                w = w.astype(jnp.bfloat16)               # cast once per tile
        prepared.append((w, b, fi, fo))

    def one_chunk(c, carry):
        if n_chunks == 1:
            off = 0
        else:
            off = pl.multiple_of(c * chunk, chunk)       # chunk is a 128-mult
        h = x_ref[:, pl.ds(off, chunk)].astype(jnp.float32)   # (in_dim, chunk)

        for li, (w, b, fi, fo) in enumerate(prepared):
            last = li == n_layers - 1
            if fi <= 8:
                # Tiny contraction (K = in_dim): unrolled VPU multiply-adds
                # instead of paying MXU push/pop latency for K = 5.
                acc = w[:, 0:1] * h[0:1, :]
                for k in range(1, fi):
                    acc = acc + w[:, k:k + 1] * h[k:k + 1, :]
            elif fo == 1:
                # fan_out == 1: a (1, chunk) MXU result uses ~1 sublane of the
                # array; do lane-broadcast multiply + cross-sublane reduce on
                # the XLU instead (free VLIW slot, no MRF drain).
                acc = jnp.sum(w * h, axis=0, keepdims=True)
            else:
                # The only real matmul (32x32).  Keep elementwise math f32
                # everywhere (v5e has no bf16 VALU); cast only at the dot.
                acc = jnp.dot(w, h.astype(w.dtype),
                              preferred_element_type=jnp.float32)
            h = acc + b
            if not last:                                 # ReLU on hidden layers
                h = jnp.maximum(h, 0.0)

        if abs_out:
            h = jnp.abs(h)
        o_ref[:, pl.ds(off, chunk)] = h.astype(o_ref.dtype)
        return carry

    if n_chunks == 1:
        one_chunk(0, 0)
    else:
        # A rolled loop keeps the (32, chunk) working set (~16-24 vregs)
        # register-resident per iteration; per-iteration scalar overhead is
        # negligible vs the ~512-lane chunk of vector work.
        jax.lax.fori_loop(0, n_chunks, one_chunk, 0)


# --------------------------- parameter packing --------------------------------
def pack_nitf_params(weights, biases):
    """Pack per-layer (fan_in, fan_out) weights and (fan_out,) biases into one
    f32 buffer.

    Each layer occupies rows [r0, r0+fan_out): cols [0, fan_in) hold W^T and
    col fan_in holds the bias.  Layers with fan_out == 1 additionally get a
    (fan_in, 1) column copy of W at rows [c0, c0+fan_in) so the kernel can do
    the sublane-reduce formulation without an in-kernel transpose.  All row
    offsets are 8-aligned (sublane-aligned slices).

    Returns (packed, layer_meta); layer_meta[l] = (r0, fan_in, fan_out, c0)
    with c0 == -1 when no column copy exists.
    """
    rows = 0
    metas = []
    for w, _ in zip(weights, biases):
        fi, fo = w.shape
        r0 = rows
        rows = _round_up(rows + fo, 8)
        c0 = -1
        if fo == 1 and fi > 8:
            c0 = rows
            rows = _round_up(rows + fi, 8)
        metas.append((r0, fi, fo, c0))
    cols = max(w.shape[0] for w in weights) + 1           # max fan_in + bias col

    packed = jnp.zeros((rows, cols), jnp.float32)
    for (w, b), (r0, fi, fo, c0) in zip(zip(weights, biases), metas):
        wf = jnp.asarray(w, jnp.float32)
        packed = packed.at[r0:r0 + fo, 0:fi].set(wf.T)
        packed = packed.at[r0:r0 + fo, fi].set(jnp.asarray(b, jnp.float32))
        if c0 >= 0:
            packed = packed.at[c0:c0 + fi, 0].set(wf[:, 0])
    return packed, tuple(metas)


# ------------------------------ tiling heuristics ------------------------------
_CHUNK = 512        # lane group kept vreg-resident through all layers
_MAX_TILE = 8192    # ~40 B VMEM/sample -> <1 MiB of buffers per step


def _num_tensorcores() -> int:
    """Best-effort TensorCore count per chip (v7x: 2, v5e/v6e: 1)."""
    try:
        info = pltpu.get_tpu_info()
        for name in ("num_cores", "core_count", "tensorcore_count",
                     "num_tensorcores", "cores_per_chip"):
            v = getattr(info, name, None)
            if isinstance(v, int) and v > 0:
                return v
    except Exception:
        pass
    try:
        if "v7" in jax.devices()[0].device_kind.lower():
            return 2
    except Exception:
        pass
    return 1


def _choose_tiling(n: int, n_cores: int):
    """Pick (tile_n, chunk): big tiles amortize the ~0.35 us/grid-step cost; on
    multi-TC chips keep a core-count multiple of steps so the "parallel" grid
    axis shards evenly; on 1-TC chips never split small N (pure overhead)."""
    if n <= _CHUNK:
        tile = max(128, _round_up(n, 128))
        return tile, tile
    steps = max(n_cores, pl.cdiv(n, _MAX_TILE))
    if n_cores > 1:
        steps = _round_up(steps, n_cores)
    tile = _round_up(pl.cdiv(n, steps), _CHUNK)
    return tile, _CHUNK


# ------------------------------ forward wrapper --------------------------------
def nitf_forward(x, packed_params, layer_meta, *, abs_out=True, tile_n=None,
                 chunk=None, mxu_bf16=False, lane_dense_output=False):
    """NITF MLP forward via Pallas.

    x: (N, in_dim) float32.  Returns (N, 1) float32 (matches the PyTorch
    module), or the raw lane-dense (1, N) slab if lane_dense_output=True.
    """
    N, in_dim = x.shape
    if tile_n is None:
        tile_n, auto_chunk = _choose_tiling(N, _num_tensorcores())
        if chunk is None:
            chunk = auto_chunk
    elif chunk is None:
        chunk = _CHUNK if tile_n % _CHUNK == 0 else tile_n
    assert tile_n % 128 == 0 and chunk % 128 == 0 and tile_n % chunk == 0

    # Samples on the lane axis.  No host-side padding: the grid is ragged and
    # Pallas masks the partial edge block on writeback (per-lane network, so
    # garbage tail lanes never contaminate valid ones).
    xt = jnp.asarray(x, jnp.float32).T                   # (in_dim, N)

    grid = (pl.cdiv(N, tile_n),)
    kernel = functools.partial(_nitf_kernel, layer_meta, abs_out, chunk, mxu_bf16)

    out = pl.pallas_call(
        kernel,
        out_shape=jax.ShapeDtypeStruct((1, N), jnp.float32),
        grid_spec=pl.GridSpec(
            grid=grid,
            in_specs=[
                # x tile: contiguous (in_dim, tile_n) slab, lane-dense.
                pl.BlockSpec((in_dim, tile_n), lambda i: (0, i)),
                # Packed params: full array, constant block index -> DMA'd once
                # and kept VMEM-resident across grid steps.
                pl.BlockSpec(packed_params.shape, lambda i: (0, 0)),
            ],
            out_specs=pl.BlockSpec((1, tile_n), lambda i: (0, i)),
        ),
        compiler_params=pltpu.CompilerParams(
            dimension_semantics=("parallel",),
        ),
    )(xt, packed_params)

    if lane_dense_output:
        return out
    # (1, N) -> (N, 1) preserves row-major data order (cheap reshape).
    return out.reshape(N, 1)


# --------------------------- parameter construction --------------------------
def init_nitf_params(hp: HParams, key, is_vocal: bool = True):
    """Deterministic nn.Linear-style init (uniform +-1/sqrt(fan_in))."""
    in_dim = nitf_in_dim(hp, is_vocal)
    dims = [in_dim] + [hp.nif_width] * hp.nif_depth + [1]
    weights, biases = [], []
    for fan_in, fan_out in zip(dims[:-1], dims[1:]):
        key, kw, kb = jax.random.split(key, 3)
        bound = 1.0 / jnp.sqrt(jnp.float32(fan_in))
        weights.append(
            jax.random.uniform(kw, (fan_in, fan_out), jnp.float32, -bound, bound))
        biases.append(
            jax.random.uniform(kb, (fan_out,), jnp.float32, -bound, bound))
    return weights, biases


def nitf_reference(x, weights, biases, abs_out=True):
    h = x
    for i, (w, b) in enumerate(zip(weights, biases)):
        h = h @ w + b
        if i < len(weights) - 1:
            h = jnp.maximum(h, 0.0)
    return jnp.abs(h) if abs_out else h


# ----------------------------------- main -------------------------------------
if __name__ == "__main__":
    hp = HParams()
    key = jax.random.PRNGKey(0)
    key, kx, kx2 = jax.random.split(key, 3)

    in_dim = nitf_in_dim(hp)                 # 1 + f0 + amp + n_vowel_dims = 5
    weights, biases = init_nitf_params(hp, key)
    packed, layer_meta = pack_nitf_params(weights, biases)

    # --- main case: N = 512 samples -------------------------------------------
    N = 512
    x = jax.random.normal(kx, (N, in_dim), jnp.float32)
    ref = nitf_reference(x, weights, biases, abs_out=hp.nif_abs_out)

    out = nitf_forward(x, packed, layer_meta, abs_out=hp.nif_abs_out)
    out = jax.block_until_ready(out)
    assert out.shape == (N, 1)
    assert jnp.allclose(out, ref, atol=5e-5, rtol=1e-5)

    # --- ragged N (exercises the pad-free masked edge block) ------------------
    N2 = 700
    x2 = jax.random.normal(kx2, (N2, in_dim), jnp.float32)
    ref2 = nitf_reference(x2, weights, biases, abs_out=hp.nif_abs_out)
    out2 = jax.block_until_ready(
        nitf_forward(x2, packed, layer_meta, abs_out=hp.nif_abs_out))
    assert out2.shape == (N2, 1)
    assert jnp.allclose(out2, ref2, atol=5e-5, rtol=1e-5)

    # --- bf16 MXU operands for the 32x32 layer (looser tolerance) -------------
    out_bf16 = jax.block_until_ready(
        nitf_forward(x, packed, layer_meta, abs_out=hp.nif_abs_out, mxu_bf16=True))
    assert jnp.allclose(out_bf16, ref, atol=5e-2, rtol=5e-2)

    # TODO(synk): simplifyDredge / renormConfidence are optimizer-state
    # maintenance routines (not part of forward) and are not kernelized; the
    # latent buffers (vowel_embs, dredge_*, amp_latent) are training-time
    # parameters unused by forward.
    print("KERNEL_OK")
</pallas_src>

<mosaic_0001>
module attributes {stable_mosaic.version = 11 : i64} {
  func.func @_nitf_kernel(%arg0: i32, %arg1: memref<5x512xf32, #tpu.memory_space<vmem>>, %arg2: memref<104x33xf32, #tpu.memory_space<vmem>>, %arg3: memref<1x512xf32, #tpu.memory_space<vmem>>) attributes {dimension_semantics = [#tpu.dimension_semantics<parallel>], iteration_bounds = array<i64: 1>, scalar_prefetch = 0 : i64, scratch_operands = 0 : i64, tpu.core_type = #tpu.core_type<tc>, window_params = [{transform_indices = @transform_0, window_bounds = array<i64: 5, 512>}, {pipeline_mode = #tpu.pipeline_mode<synchronous>, transform_indices = @transform_1, window_bounds = array<i64: 104, 33>}, {transform_indices = @transform_2, window_bounds = array<i64: 1, 512>}]} {
    %c0 = arith.constant 0 : index
    %c5 = arith.constant 5 : index
    %0 = vector.load %arg2[%c0, %c5] : memref<104x33xf32, #tpu.memory_space<vmem>>, vector<32x1xf32>
    %c0_0 = arith.constant 0 : index
    %c0_1 = arith.constant 0 : index
    %1 = vector.load %arg2[%c0_0, %c0_1] : memref<104x33xf32, #tpu.memory_space<vmem>>, vector<32x5xf32>
    %c32 = arith.constant 32 : index
    %c32_2 = arith.constant 32 : index
    %2 = vector.load %arg2[%c32, %c32_2] : memref<104x33xf32, #tpu.memory_space<vmem>>, vector<32x1xf32>
    %c32_3 = arith.constant 32 : index
    %c0_4 = arith.constant 0 : index
    %3 = vector.load %arg2[%c32_3, %c0_4] : memref<104x33xf32, #tpu.memory_space<vmem>>, vector<32x32xf32>
    %c64 = arith.constant 64 : index
    %c32_5 = arith.constant 32 : index
    %4 = vector.load %arg2[%c64, %c32_5] : memref<104x33xf32, #tpu.memory_space<vmem>>, vector<1x1xf32>
    %c72 = arith.constant 72 : index
    %c0_6 = arith.constant 0 : index
    %5 = vector.load %arg2[%c72, %c0_6] : memref<104x33xf32, #tpu.memory_space<vmem>>, vector<32x1xf32>
    %c0_7 = arith.constant 0 : index
    %c0_8 = arith.constant 0 : index
    %6 = vector.load %arg1[%c0_7, %c0_8] : memref<5x512xf32, #tpu.memory_space<vmem>>, vector<5x512xf32>
    %7 = vector.extract_strided_slice %1 {offsets = [0, 0], sizes = [32, 1], strides = [1, 1]} : vector<32x5xf32> to vector<32x1xf32>
    %8 = vector.extract_strided_slice %6 {offsets = [0, 0], sizes = [1, 512], strides = [1, 1]} : vector<5x512xf32> to vector<1x512xf32>
    %9 = vector.broadcast %7 : vector<32x1xf32> to vector<32x512xf32>
    %10 = vector.broadcast %8 : vector<1x512xf32> to vector<32x512xf32>
    %11 = arith.mulf %9, %10 : vector<32x512xf32>
    %12 = vector.extract_strided_slice %1 {offsets = [0, 1], sizes = [32, 1], strides = [1, 1]} : vector<32x5xf32> to vector<32x1xf32>
    %13 = vector.extract_strided_slice %6 {offsets = [1, 0], sizes = [1, 512], strides = [1, 1]} : vector<5x512xf32> to vector<1x512xf32>
    %14 = vector.broadcast %12 : vector<32x1xf32> to vector<32x512xf32>
    %15 = vector.broadcast %13 : vector<1x512xf32> to vector<32x512xf32>
    %16 = arith.mulf %14, %15 : vector<32x512xf32>
    %17 = arith.addf %11, %16 : vector<32x512xf32>
    %18 = vector.extract_strided_slice %1 {offsets = [0, 2], sizes = [32, 1], strides = [1, 1]} : vector<32x5xf32> to vector<32x1xf32>
    %19 = vector.extract_strided_slice %6 {offsets = [2, 0], sizes = [1, 512], strides = [1, 1]} : vector<5x512xf32> to vector<1x512xf32>
    %20 = vector.broadcast %18 : vector<32x1xf32> to vector<32x512xf32>
    %21 = vector.broadcast %19 : vector<1x512xf32> to vector<32x512xf32>
    %22 = arith.mulf %20, %21 : vector<32x512xf32>
    %23 = arith.addf %17, %22 : vector<32x512xf32>
    %24 = vector.extract_strided_slice %1 {offsets = [0, 3], sizes = [32, 1], strides = [1, 1]} : vector<32x5xf32> to vector<32x1xf32>
    %25 = vector.extract_strided_slice %6 {offsets = [3, 0], sizes = [1, 512], strides = [1, 1]} : vector<5x512xf32> to vector<1x512xf32>
    %26 = vector.broadcast %24 : vector<32x1xf32> to vector<32x512xf32>
    %27 = vector.broadcast %25 : vector<1x512xf32> to vector<32x512xf32>
    %28 = arith.mulf %26, %27 : vector<32x512xf32>
    %29 = arith.addf %23, %28 : vector<32x512xf32>
    %30 = vector.extract_strided_slice %1 {offsets = [0, 4], sizes = [32, 1], strides = [1, 1]} : vector<32x5xf32> to vector<32x1xf32>
    %31 = vector.extract_strided_slice %6 {offsets = [4, 0], sizes = [1, 512], strides = [1, 1]} : vector<5x512xf32> to vector<1x512xf32>
    %32 = vector.broadcast %30 : vector<32x1xf32> to vector<32x512xf32>
    %33 = vector.broadcast %31 : vector<1x512xf32> to vector<32x512xf32>
    %34 = arith.mulf %32, %33 : vector<32x512xf32>
    %35 = arith.addf %29, %34 : vector<32x512xf32>
    %36 = vector.broadcast %0 : vector<32x1xf32> to vector<32x512xf32>
    %37 = arith.addf %35, %36 : vector<32x512xf32>
    %cst = arith.constant 0.000000e+00 : f32
    %38 = vector.broadcast %cst : f32 to vector<32x512xf32>
    %39 = arith.maximumf %37, %38 : vector<32x512xf32>
    %cst_9 = arith.constant dense<0.000000e+00> : vector<32x512xf32>
    %40 = tpu.matmul %3, %39, %cst_9 {dimension_numbers = #tpu.dot_dimension_numbers<[1], [0], [0], [1], [0, 0, 1, 1], [], []>} : vector<32x32xf32>, vector<32x512xf32>, vector<32x512xf32> -> vector<32x512xf32>
    %41 = vector.broadcast %2 : vector<32x1xf32> to vector<32x512xf32>
    %42 = arith.addf %40, %41 : vector<32x512xf32>
    %cst_10 = arith.constant 0.000000e+00 : f32
    %43 = vector.broadcast %cst_10 : f32 to vector<32x512xf32>
    %44 = arith.maximumf %42, %43 : vector<32x512xf32>
    %45 = vector.broadcast %5 : vector<32x1xf32> to vector<32x512xf32>
    %46 = arith.mulf %45, %44 : vector<32x512xf32>
    %cst_11 = arith.constant dense<0.000000e+00> : vector<512xf32>
    %47 = vector.multi_reduction <add>, %46, %cst_11 [0] : vector<32x512xf32> to vector<512xf32>
    %48 = vector.shape_cast %47 : vector<512xf32> to vector<1x512xf32>
    %49 = vector.broadcast %4 : vector<1x1xf32> to vector<1x512xf32>
    %50 = arith.addf %48, %49 : vector<1x512xf32>
    %51 = math.absf %50 : vector<1x512xf32>
    %c0_12 = arith.constant 0 : index
    %c0_13 = arith.constant 0 : index
    %52 = vector.load %arg3[%c0_12, %c0_13] : memref<1x512xf32, #tpu.memory_space<vmem>>, vector<1x512xf32>
    tpu.vector_store %arg3[%c0_12, %c0_13], %51 {strides = array<i32>} : memref<1x512xf32, #tpu.memory_space<vmem>>, vector<1x512xf32>,
    return
  }
  func.func @transform_0(%arg0: i32) -> (i32, i32) {
    %c0_i32 = arith.constant 0 : i32
    %c0_i32_0 = arith.constant 0 : i32
    return %c0_i32, %arg0 : i32, i32
  }
  func.func @transform_1(%arg0: i32) -> (i32, i32) {
    %c0_i32 = arith.constant 0 : i32
    %c0_i32_0 = arith.constant 0 : i32
    %c0_i32_1 = arith.constant 0 : i32
    return %c0_i32, %c0_i32_0 : i32, i32
  }
  func.func @transform_2(%arg0: i32) -> (i32, i32) {
    %c0_i32 = arith.constant 0 : i32
    %c0_i32_0 = arith.constant 0 : i32
    return %c0_i32, %arg0 : i32, i32
  }
}

</mosaic_0001>

<bundles_post_ra>
// kernel: tpu_custom_call.1
= control target key start
LH: loop header
LB: loop body
LE: loop exit
PB: predicated region body
PF: predicated region fallthrough
CT: control target
= control target key end

     0   :  { %v1010_v2 = vmov 0   ;;  %s1007_s0 = inlined_call_operand.vmem [shape: f32[5,512], index: 0, kind: input, shape index: {}]   ;;  %s1008_s1 = inlined_call_operand.vmem [shape: f32[104,33], index: 1, kind: input, shape index: {}]   ;;  %s1009_s2 = inlined_call_operand.hbm [shape: f32[1,512], index: 2, kind: output, shape index: {}]  }
   0x1   :  { %v15_v0 = vld [vmem:[%s1008_s1 + $0x18] sm:$0xff]  ;;  %v14_v1 = vld [vmem:[%s1008_s1 + $0x10] sm:$0xff]  ;;  %632 = vset.pattern.permute.xlu1 %v1010_v2  ;;  %630 = vset.pattern.permute.xlu0 %v1010_v2 }
   0x2   :  { %7 = vsyncpa [#allocation3], 0  ;;  %v683_v3 = vmov 2   ;;  %46 = vperm.xlu0 %630, %v15_v0   ;;  %41 = vperm.xlu1 %632, %v14_v1   ;;  %v684_v4 = vmov 1   ;;  %v13_v5 = vld [vmem:[%s1008_s1 + $0x8] sm:$0xff]  ;;  %v685_v6 = vmov 3  }
   0x3   :  { %634 = vset.pattern.permute.xlu2 %v683_v3  ;;  %v12_v7 = vld [vmem:[%s1008_s1] sm:$0xff]  ;;  %v686_v8 = vmov 4   ;;  %v687_v9 = vmov 5   ;;  %v26_v18 = vld [vmem:[%s1007_s0 + $0x8] sm:$0x1f]  ;;  %vm345_vm0 = vcmask 261120  }
   0x4   :  { %134 = vperm.xlu2 %634, %v15_v0   ;;  %v25_v17 = vld [vmem:[%s1007_s0] sm:$0x1f]  ;;  %v27_v20 = vld [vmem:[%s1007_s0 + $0x10] sm:$0x1f]  ;;  %v28_v21 = vld [vmem:[%s1007_s0 + $0x18] sm:$0x1f] }
   0x5   :  { %v735_v22 = vperm.slane %v25_v17, 2  ;;  %v737_v23 = vperm.slane %v26_v18, 2  ;;  %v739_v24 = vperm.slane %v27_v20, 2  ;;  %v741_v25 = vperm.slane %v28_v21, 2  ;;  %s597_s17 = sshll.u32 %s1009_s2, 4  ;;  %s598_s17 = int_to_ptr.hbm [resolvable:$true] %s597_s17 }
   0x6   :  { %v743_v27 = vperm.slane %v25_v17, 0  ;;  %v745_v28 = vperm.slane %v26_v18, 0  ;;  %v747_v29 = vperm.slane %v27_v20, 0  ;;  %v749_v30 = vperm.slane %v28_v21, 0 }
   0x7   :  { %1021 = vst [vmem:[#allocation5_spill] sm:$0xff] %v735_v22  ;;  %v85_v31 = vperm.slane %v25_v17, 1  ;;  %v86_v32 = vperm.slane %v26_v18, 1  ;;  %v87_v35 = vperm.slane %v27_v20, 1  ;;  %v88_v36 = vperm.slane %v28_v21, 1 }
   0x8   :  { %1022 = vst [vmem:[#allocation6_spill] sm:$0xff] %v737_v23  ;;  %v763_v39 = vperm.slane %v25_v17, 3  ;;  %v765_v40 = vperm.slane %v26_v18, 3  ;;  %v775_v44 = vperm.slane %v27_v20, 3  ;;  %v777_v45 = vperm.slane %v28_v21, 3 }
   0x9   :  { %1023 = vst [vmem:[#allocation7_spill] sm:$0xff] %v739_v24  ;;  %v785_v49 = vperm.slane %v25_v17, 4  ;;  %v787_v50 = vperm.slane %v26_v18, 4  ;;  %v791_v53 = vperm.slane %v27_v20, 4  ;;  %v793_v54 = vperm.slane %v28_v21, 4 }
   0xa   :  { %631 = vset.pattern.permute.xlu0 %v684_v4  ;;  %633 = vset.pattern.permute.xlu1 %v684_v4  ;;  %1024 = vst [vmem:[#allocation8_spill] sm:$0xff] %v741_v25  ;;  %vm578_vm1 = vcmask 1040384   ;;  %vm580_vm2 = vcmask 1042434   ;;  %vm582_vm3 = vcmask 1041408  }
   0xb   :  { %82 = vperm.xlu0 %631, %v15_v0   ;;  %78 = vperm.xlu1 %633, %v14_v1   ;;  %1025 = vst [vmem:[#allocation9_spill] sm:$0xff] %v793_v54 }
   0xc   :  { %635 = vset.pattern.permute.xlu2 %v1010_v2 }
   0xd   :  { %36 = vperm.xlu2 %635, %v13_v5  }
  0x13   :  { %637 = vset.pattern.permute.xlu0 %v685_v6  ;;  %74 = vperm.xlu1 %633, %v13_v5  }
  0x14   :  { %186 = vperm.xlu0 %637, %v15_v0  }
  0x15   :  { %636 = vset.pattern.permute.xlu2 %v683_v3 }
  0x16   :  { %130 = vperm.xlu2 %636, %v14_v1  }
  0x1b   :  { %638 = vset.pattern.permute.xlu1 %v1010_v2 }
  0x1c   :  { %642 = vset.pattern.permute.xlu0 %v686_v8  ;;  %31 = vperm.xlu1 %638, %v12_v7  }
  0x1d   :  { %238 = vperm.xlu0 %642, %v15_v0  }
  0x1e   :  { %639 = vset.pattern.permute.xlu2 %v684_v4 }
  0x1f   :  { %70 = vperm.xlu2 %639, %v12_v7  }
  0x24   :  { %640 = vset.pattern.permute.xlu1 %v683_v3 }
  0x25   :  { %126 = vperm.xlu1 %640, %v13_v5   ;;  %230 = vperm.xlu0 %642, %v13_v5  }
  0x27   :  { %641 = vset.pattern.permute.xlu2 %v685_v6 }
  0x28   :  { %182 = vperm.xlu2 %641, %v14_v1  }
  0x2d   :  { %122 = vperm.xlu1 %640, %v12_v7   ;;  %646 = vset.pattern.permute.xlu0 %v687_v9 }
  0x2e   :  { %286 = vperm.xlu0 %646, %v14_v1  }
  0x30   :  { %178 = vperm.xlu2 %641, %v13_v5  }
  0x35   :  { %643 = vset.pattern.permute.xlu1 %v686_v8 }
  0x36   :  { %234 = vperm.xlu1 %643, %v14_v1  }
  0x38   :  { %174 = vperm.xlu2 %641, %v12_v7  }
  0x3e   :  { %644 = vset.pattern.permute.xlu1 %v687_v9 }
  0x3f   :  { %290 = vperm.xlu1 %644, %v15_v0  }
  0x40   :  { %645 = vset.pattern.permute.xlu2 %v686_v8 }
  0x41   :  { %226 = vperm.xlu2 %645, %v12_v7  }
  0x47   :  { %282 = vperm.xlu1 %644, %v13_v5  }
  0x49   :  { %647 = vset.pattern.permute.xlu2 %v687_v9 }
  0x4a   :  { %278 = vperm.xlu2 %647, %v12_v7  }
  0x5e   :  { %v135_v10 = vpop.permute.xlu2 %134 }
  0x5f   :  { %v752_v33 = vmul.f32 %v735_v22, %v135_v10  ;;  %v755_v34 = vmul.f32 %v737_v23, %v135_v10  ;;  %v758_v37 = vmul.f32 %v739_v24, %v135_v10  ;;  %v761_v38 = vmul.f32 %v741_v25, %v135_v10 }
  0x67   :  { %v37_v11 = vpop.permute.xlu2 %36 }
  0x68   :  { %v770_v42 = vmul.f32 %v743_v27, %v37_v11  ;;  %v773_v43 = vmul.f32 %v745_v28, %v37_v11  ;;  %v780_v46 = vmul.f32 %v747_v29, %v37_v11  ;;  %v783_v47 = vmul.f32 %v749_v30, %v37_v11 }
  0x70   :  { %v131_v13 = vpop.permute.xlu2 %130 }
  0x71   :  { %v149_v51 = vmul.f32 %v735_v22, %v131_v13  ;;  %v150_v52 = vmul.f32 %v737_v23, %v131_v13  ;;  %v151_v55 = vmul.f32 %v739_v24, %v131_v13  ;;  %v152_v56 = vmul.f32 %v741_v25, %v131_v13 }
  0x74   :  { %v42_v12 = vpop.permute.xlu1 %41  ;;  %v47_v15 = vpop.permute.xlu0 %46 }
  0x75   :  { %v65_v57 = vmul.f32 %v743_v27, %v47_v15  ;;  %v66_v58 = vmul.f32 %v745_v28, %v47_v15  ;;  %v67_v59 = vmul.f32 %v747_v29, %v47_v15  ;;  %v68_v60 = vmul.f32 %v749_v30, %v47_v15 }
  0x76   :  { %v61_v5 = vmul.f32 %v743_v27, %v42_v12  ;;  %v62_v6 = vmul.f32 %v745_v28, %v42_v12  ;;  %v63_v9 = vmul.f32 %v747_v29, %v42_v12  ;;  %v64_v10 = vmul.f32 %v749_v30, %v42_v12 }
  0x79   :  { %v71_v19 = vpop.permute.xlu2 %70 }
  0x7a   :  { %v89_v11 = vmul.f32 %v85_v31, %v71_v19  ;;  %v805_v13 = vmul.f32 %v86_v32, %v71_v19  ;;  %v807_v15 = vmul.f32 %v87_v35, %v71_v19  ;;  %v809_v17 = vmul.f32 %v88_v36, %v71_v19 }
  0x7c   :  { %1026 = vst [vmem:[#allocation10_spill] sm:$0xff] %v805_v13 }
  0x7d   :  { %v79_v14 = vpop.permute.xlu1 %78  ;;  %v83_v26 = vpop.permute.xlu0 %82 }
  0x7e   :  { %v101_v61 = vmul.f32 %v85_v31, %v83_v26  ;;  %v102_v62 = vmul.f32 %v86_v32, %v83_v26  ;;  %v103_v63 = vmul.f32 %v87_v35, %v83_v26  ;;  %v104_v0 = vmul.f32 %v88_v36, %v83_v26 }
  0x7f   :  { %v97_v1 = vmul.f32 %v85_v31, %v79_v14  ;;  %v98_v3 = vmul.f32 %v86_v32, %v79_v14  ;;  %v99_v7 = vmul.f32 %v87_v35, %v79_v14  ;;  %v100_v8 = vmul.f32 %v88_v36, %v79_v14 }
  0x80   :  { %v117_v18 = vadd.f32 %v101_v61, %v65_v57  ;;  %v118_v20 = vadd.f32 %v102_v62, %v66_v58  ;;  %v119_v26 = vadd.f32 %v103_v63, %v67_v59  ;;  %v120_v2 = vadd.f32 %v104_v0, %v68_v60 }
  0x81   :  { %v113_v25 = vadd.f32 %v97_v1, %v61_v5  ;;  %v114_v24 = vadd.f32 %v98_v3, %v62_v6  ;;  %v115_v23 = vadd.f32 %v99_v7, %v63_v9  ;;  %v116_v22 = vadd.f32 %v100_v8, %v64_v10 }
  0x82   :  { %v183_v48 = vpop.permute.xlu2 %182  ;;  %v169_v1 = vadd.f32 %v752_v33, %v117_v18  ;;  %v868_v18 = vld [vmem:[%s1008_s1 + $0x20] sm:$0xff] }
  0x83   :  { %v201_v12 = vmul.f32 %v763_v39, %v183_v48  ;;  %v202_v54 = vmul.f32 %v765_v40, %v183_v48  ;;  %v203_v13 = vmul.f32 %v775_v44, %v183_v48  ;;  %v204_v19 = vmul.f32 %v777_v45, %v183_v48 }
  0x84   :  { %v170_v48 = vadd.f32 %v755_v34, %v118_v20  ;;  %v165_v3 = vadd.f32 %v149_v51, %v113_v25  ;;  %v167_v6 = vadd.f32 %v151_v55, %v115_v23  ;;  %v168_v7 = vadd.f32 %v152_v56, %v116_v22  ;;  %v1027_v56 = vld [vmem:[#allocation9_spill] sm:$0xff] }
  0x85   :  { %v721_v16 = vpop.permute.xlu1 %74  ;;  %v688_v20 = vmov 32  }
  0x86   :  { %v187_v4 = vpop.permute.xlu0 %186  ;;  %v93_v57 = vmul.f32 %v85_v31, %v721_v16  ;;  %v94_v58 = vmul.f32 %v86_v32, %v721_v16  ;;  %v95_v59 = vmul.f32 %v87_v35, %v721_v16  ;;  %v96_v60 = vmul.f32 %v88_v36, %v721_v16  ;;  %648 = vset.pattern.permute.xlu1 %v688_v20 }
  0x87   :  { %v205_v61 = vmul.f32 %v763_v39, %v187_v4  ;;  %v206_v62 = vmul.f32 %v765_v40, %v187_v4  ;;  %v207_v63 = vmul.f32 %v775_v44, %v187_v4  ;;  %v208_v0 = vmul.f32 %v777_v45, %v187_v4  ;;  %327 = vperm.xlu1 %648, %v868_v18  }
  0x88   :  { %v171_v31 = vadd.f32 %v758_v37, %v119_v26  ;;  %v172_v32 = vadd.f32 %v761_v38, %v120_v2  ;;  %v166_v35 = vadd.f32 %v150_v52, %v114_v24  ;;  %v830_v16 = vadd.f32 %v93_v57, %v770_v42  ;;  %v1028_v26 = vld [vmem:[#allocation10_spill] sm:$0xff]  ;;  %650 = vset.pattern.permute.xlu0 %v688_v20 }
  0x89   :  { %v833_v36 = vadd.f32 %v94_v58, %v773_v43  ;;  %v836_v4 = vadd.f32 %v95_v59, %v780_v46  ;;  %v839_v33 = vadd.f32 %v96_v60, %v783_v47  ;;  %v221_v37 = vadd.f32 %v205_v61, %v169_v1  ;;  %649 = vset.pattern.permute.xlu2 %v688_v20 }
  0x8a   :  { %v179_v14 = vpop.permute.xlu2 %178  ;;  %v222_v2 = vadd.f32 %v206_v62, %v170_v48  ;;  %v223_v38 = vadd.f32 %v207_v63, %v171_v31  ;;  %v224_v42 = vadd.f32 %v208_v0, %v172_v32  ;;  %v217_v55 = vadd.f32 %v201_v12, %v165_v3  ;;  %v1031_v62 = vld [vmem:[#allocation7_spill] sm:$0xff]  ;;  %v1032_v0 = vld [vmem:[#allocation8_spill] sm:$0xff] }
  0x8b   :  { %v844_v25 = vmul.f32 %v763_v39, %v179_v14  ;;  %v853_v46 = vmul.f32 %v765_v40, %v179_v14  ;;  %v856_v47 = vmul.f32 %v775_v44, %v179_v14  ;;  %v219_v9 = vadd.f32 %v203_v13, %v167_v6 }
  0x8c   :  { %v220_v10 = vadd.f32 %v204_v19, %v168_v7 }
  0x8e   :  { %v767_v41 = vpop.permute.xlu1 %31 }
  0x8f   :  { %v239_v5 = vpop.permute.xlu0 %238  ;;  %v53_v24 = vmul.f32 %v743_v27, %v767_v41  ;;  %v54_v22 = vmul.f32 %v745_v28, %v767_v41  ;;  %v55_v23 = vmul.f32 %v747_v29, %v767_v41  ;;  %v56_v43 = vmul.f32 %v749_v30, %v767_v41 }
  0x90   :  { %v859_v27 = vmul.f32 %v777_v45, %v179_v14  ;;  %v257_v52 = vmul.f32 %v785_v49, %v239_v5  ;;  %v258_v28 = vmul.f32 %v787_v50, %v239_v5  ;;  %v259_v29 = vmul.f32 %v791_v53, %v239_v5 }
  0x91   :  { %v260_v8 = vmul.f32 %v1027_v56, %v239_v5  ;;  %v105_v30 = vadd.f32 %v89_v11, %v53_v24  ;;  %v218_v41 = vadd.f32 %v202_v54, %v166_v35  ;;  %v106_v14 = vadd.f32 %v1028_v26, %v54_v22  ;;  %v925_v22 = vld [vmem:[%s1008_s1 + $0x30] sm:$0xff] }
  0x92   :  { %v175_v51 = vpop.permute.xlu2 %174  ;;  %v107_v12 = vadd.f32 %v807_v15, %v55_v23  ;;  %v108_v57 = vadd.f32 %v809_v17, %v56_v43  ;;  %v887_v15 = vld [vmem:[%s1008_s1 + $0x28] sm:$0xff]  ;;  %v273_v17 = vadd.f32 %v257_v52, %v221_v37  ;;  %v274_v59 = vadd.f32 %v258_v28, %v222_v2  ;;  %337 = vperm.xlu0 %650, %v925_v22  }
  0x93   :  { %v193_v54 = vmul.f32 %v763_v39, %v175_v51  ;;  %v194_v11 = vmul.f32 %v765_v40, %v175_v51  ;;  %v879_v13 = vmul.f32 %v775_v44, %v175_v51  ;;  %v882_v19 = vmul.f32 %v777_v45, %v175_v51  ;;  %332 = vperm.xlu2 %649, %v887_v15   ;;  %v1029_v40 = vld [vmem:[#allocation5_spill] sm:$0xff]  ;;  %v1030_v45 = vld [vmem:[#allocation6_spill] sm:$0xff] }
  0x94   :  { %v275_v60 = vadd.f32 %v259_v29, %v223_v38  ;;  %v276_v39 = vadd.f32 %v260_v8, %v224_v42  ;;  %v920_v42 = vld [vmem:[%s1008_s1 + $0x38] sm:$0xff] }
  0x95   :  { %342 = vperm.xlu1 %648, %v920_v42  }
  0x97   :  { %v811_v21 = vpop.permute.xlu1 %126  ;;  %v231_v58 = vpop.permute.xlu0 %230 }
  0x98   :  { %v145_v44 = vmul.f32 %v1029_v40, %v811_v21  ;;  %v146_v61 = vmul.f32 %v1030_v45, %v811_v21  ;;  %v147_v63 = vmul.f32 %v1031_v62, %v811_v21  ;;  %v148_v1 = vmul.f32 %v1032_v0, %v811_v21 }
  0x99   :  { %v249_v5 = vmul.f32 %v785_v49, %v231_v58  ;;  %v905_v6 = vmul.f32 %v787_v50, %v231_v58  ;;  %v908_v7 = vmul.f32 %v791_v53, %v231_v58  ;;  %v911_v37 = vmul.f32 %v1027_v56, %v231_v58 }
  0x9a   :  { %v161_v23 = vadd.f32 %v145_v44, %v830_v16  ;;  %v162_v43 = vadd.f32 %v146_v61, %v833_v36  ;;  %v164_v51 = vadd.f32 %v148_v1, %v839_v33 }
  0x9b   :  { %v227_v52 = vpop.permute.xlu2 %226 }
  0x9c   :  { %v245_v58 = vmul.f32 %v785_v49, %v227_v52  ;;  %v247_v16 = vmul.f32 %v791_v53, %v227_v52  ;;  %v248_v36 = vmul.f32 %v1027_v56, %v227_v52 }
  0x9f   :  { %v123_v34 = vpop.permute.xlu1 %122 }
  0xa0   :  { %v141_v31 = vmul.f32 %v1029_v40, %v123_v34  ;;  %v142_v32 = vmul.f32 %v1030_v45, %v123_v34  ;;  %v143_v21 = vmul.f32 %v1031_v62, %v123_v34  ;;  %v144_v2 = vmul.f32 %v1032_v0, %v123_v34 }
  0xa1   :  { %v163_v34 = vadd.f32 %v147_v63, %v836_v4  ;;  %v246_v40 = vmul.f32 %v787_v50, %v227_v52  ;;  %v287_v4 = vpop.permute.xlu0 %286  ;;  %v1033_v62 = vmov 0  }
  0xa2   :  { %v157_v28 = vadd.f32 %v141_v31, %v105_v30  ;;  %v158_v29 = vadd.f32 %v142_v32, %v106_v14  ;;  %v159_v44 = vadd.f32 %v143_v21, %v107_v12  ;;  %v160_v33 = vadd.f32 %v144_v2, %v108_v57  ;;  %651 = vset.pattern.permute.xlu2 %v1033_v62 }
  0xa3   :  { %v214_v30 = vadd.f32 %v853_v46, %v162_v43  ;;  %653 = vset.pattern.permute.xlu0 %v1033_v62  ;;  %652 = vset.pattern.permute.xlu1 %v1033_v62 }
  0xa4   :  { %v209_v63 = vadd.f32 %v193_v54, %v157_v28  ;;  %v279_v54 = vpop.permute.xlu2 %278 }
  0xa5   :  { %v266_v21 = vadd.f32 %v905_v6, %v214_v30  ;;  %v24_v6 = vld [vmem:[%s1008_s1 + $0x60] sm:$0xff] }
  0xa6   :  { %503 = vperm.xlu0 %653, %v24_v6  }
  0xa8   :  { %v235_v48 = vpop.permute.xlu1 %234 }
  0xa9   :  { %v253_v3 = vmul.f32 %v785_v49, %v235_v48  ;;  %v254_v35 = vmul.f32 %v787_v50, %v235_v48  ;;  %v255_v24 = vmul.f32 %v791_v53, %v235_v48  ;;  %v256_v38 = vmul.f32 %v1027_v56, %v235_v48 }
  0xaa   :  { %v216_v49 = vadd.f32 %v859_v27, %v164_v51  ;;  %v210_v56 = vadd.f32 %v194_v11, %v158_v29  ;;  %v211_v48 = vadd.f32 %v879_v13, %v159_v44  ;;  %v261_v27 = vadd.f32 %v245_v58, %v209_v63  ;;  %v23_v44 = vld [vmem:[%s1008_s1 + $0x58] sm:$0xff] }
  0xab   :  { %v269_v8 = vadd.f32 %v253_v3, %v217_v55  ;;  %v270_v26 = vadd.f32 %v254_v35, %v218_v41  ;;  %v271_v45 = vadd.f32 %v255_v24, %v219_v9  ;;  %v272_v61 = vadd.f32 %v256_v38, %v220_v10  ;;  %v22_v35 = vld [vmem:[%s1008_s1 + $0x50] sm:$0xff] }
  0xac   :  { %v213_v55 = vadd.f32 %v844_v25, %v161_v23  ;;  %v215_v41 = vadd.f32 %v856_v47, %v163_v34  ;;  %v212_v25 = vadd.f32 %v882_v19, %v160_v33  ;;  %v262_v3 = vadd.f32 %v246_v40, %v210_v56  ;;  %493 = vperm.xlu1 %652, %v22_v35   ;;  %v20_v33 = vld [vmem:[%s1008_s1 + $0x40] sm:$0x1] }
  0xad   :  { %v301_v14 = vadd.f32 %v287_v4, %v269_v8  ;;  %v302_v53 = vadd.f32 %v287_v4, %v270_v26  ;;  %v303_v10 = vadd.f32 %v287_v4, %v271_v45  ;;  %v304_v1 = vadd.f32 %v287_v4, %v272_v61 }
  0xae   :  { %v267_v2 = vadd.f32 %v908_v7, %v215_v41  ;;  %v268_v24 = vadd.f32 %v911_v37, %v216_v49  ;;  %v293_v38 = vadd.f32 %v279_v54, %v261_v27  ;;  %v294_v23 = vadd.f32 %v279_v54, %v262_v3  ;;  %v21_v7 = vld [vmem:[%s1008_s1 + $0x48] sm:$0xff]  ;;  %655 = vset.pattern.permute.xlu0 %v688_v20  ;;  %s689_s1 = smov [#allocation2]  }
  0xaf   :  { %v317_v11 = vmax.f32 %v301_v14, 0.0  ;;  %v319_v13 = vmax.f32 %v303_v10, 0.0  ;;  %v320_v19 = vmax.f32 %v304_v1, 0.0  ;;  %488 = vperm.xlu2 %651, %v21_v7   ;;  %s595_s14 = sshll.u32 %s689_s1, 4  ;;  %s596_s14 = int_to_ptr.vmem [resolvable:$true] %s595_s14 }
  0xb0   :  { %v309_v40 = vmax.f32 %v293_v38, 0.0 }
  0xb1   :  { %v291_v50 = vpop.permute.xlu1 %290 }
  0xb2   :  { %v305_v0 = vadd.f32 %v291_v50, %v273_v17  ;;  %v306_v12 = vadd.f32 %v291_v50, %v274_v59  ;;  %v307_v57 = vadd.f32 %v291_v50, %v275_v60  ;;  %v308_v9 = vadd.f32 %v291_v50, %v276_v39 }
  0xb3   :  { %v318_v17 = vmax.f32 %v302_v53, 0.0  ;;  %v265_v59 = vadd.f32 %v249_v5, %v213_v55  ;;  %v263_v60 = vadd.f32 %v247_v16, %v211_v48  ;;  %v264_v39 = vadd.f32 %v248_v36, %v212_v25 }
  0xb4   :  { %v321_v46 = vmax.f32 %v305_v0, 0.0  ;;  %v322_v31 = vmax.f32 %v306_v12, 0.0  ;;  %v323_v47 = vmax.f32 %v307_v57, 0.0  ;;  %v324_v32 = vmax.f32 %v308_v9, 0.0  ;;  %654 = vset.pattern.permute.xlu1 %v688_v20 }
  0xb5   :  { %v295_v28 = vadd.f32 %v279_v54, %v263_v60  ;;  %v296_v29 = vadd.f32 %v279_v54, %v264_v39  ;;  %v310_v16 = vmax.f32 %v294_v23, 0.0  ;;  %560 = vperm.xlu1 %654, %v20_v33  }
  0xb6   :  { %366 = vmatpush.msra.mxu0 %v321_v46  ;;  %395 = vmatpush.msra.mxu1 %v322_v31 }
  0xb7   :  { %424 = vmatpush.msra.mxu2 %v323_v47  ;;  %453 = vmatpush.msra.mxu3 %v324_v32  ;;  %v311_v36 = vmax.f32 %v295_v28, 0.0  ;;  %v312_v4 = vmax.f32 %v296_v29, 0.0 }
  0xb8   :  { %367 = vmatpush.msra.mxu0 %v317_v11  ;;  %396 = vmatpush.msra.mxu1 %v318_v17 }
  0xb9   :  { %425 = vmatpush.msra.mxu2 %v319_v13  ;;  %454 = vmatpush.msra.mxu3 %v320_v19  ;;  %v283_v5 = vpop.permute.xlu1 %282 }
  0xba   :  { %v297_v43 = vadd.f32 %v283_v5, %v265_v59  ;;  %v298_v34 = vadd.f32 %v283_v5, %v266_v21  ;;  %v299_v51 = vadd.f32 %v283_v5, %v267_v2  ;;  %v300_v52 = vadd.f32 %v283_v5, %v268_v24  ;;  %498 = vperm.xlu2 %651, %v23_v44  }
  0xbc   :  { %v313_v37 = vmax.f32 %v297_v43, 0.0  ;;  %v314_v8 = vmax.f32 %v298_v34, 0.0  ;;  %v315_v26 = vmax.f32 %v299_v51, 0.0  ;;  %v316_v58 = vmax.f32 %v300_v52, 0.0 }
  0xbe   :  { %368 = vmatpush.msra.mxu0 %v313_v37  ;;  %397 = vmatpush.msra.mxu1 %v314_v8 }
  0xbf   :  { %426 = vmatpush.msra.mxu2 %v315_v26  ;;  %455 = vmatpush.msra.mxu3 %v316_v58 }
  0xc0   :  { %369 = vmatpush.msra.mxu0 %v309_v40  ;;  %398 = vmatpush.msra.mxu1 %v310_v16 }
  0xc1   :  { %427 = vmatpush.msra.mxu2 %v311_v36  ;;  %456 = vmatpush.msra.mxu3 %v312_v4 }
  0xc2   :  { %606 = vmatmul.msk.f32.vlgmr.msra.gmra.mxu0 %vm345_vm0, %v868_v18  ;;  %610 = vmatmul.msk.f32.vlgmr.msra.gmra.mxu1 %vm345_vm0, %v868_v18 }
  0xc3   :  { %614 = vmatmul.msk.f32.vlgmr.msra.gmra.mxu2 %vm345_vm0, %v868_v18  ;;  %618 = vmatmul.msk.f32.vlgmr.msra.gmra.mxu3 %vm345_vm0, %v868_v18 }
  0xca   :  { %607 = vmatmul.msk.f32.gmra.mxu0 %vm345_vm0, %v887_v15  ;;  %611 = vmatmul.msk.f32.gmra.mxu1 %vm345_vm0, %v887_v15 }
  0xcb   :  { %615 = vmatmul.msk.f32.gmra.mxu2 %vm345_vm0, %v887_v15  ;;  %619 = vmatmul.msk.f32.gmra.mxu3 %vm345_vm0, %v887_v15 }
  0xd2   :  { %608 = vmatmul.msk.f32.gmra.mxu0 %vm345_vm0, %v925_v22  ;;  %612 = vmatmul.msk.f32.gmra.mxu1 %vm345_vm0, %v925_v22 }
  0xd3   :  { %616 = vmatmul.msk.f32.gmra.mxu2 %vm345_vm0, %v925_v22  ;;  %620 = vmatmul.msk.f32.gmra.mxu3 %vm345_vm0, %v925_v22 }
  0xda   :  { %609 = vmatmul.msk.f32.gmra.mxu0 %vm345_vm0, %v920_v42  ;;  %613 = vmatmul.msk.f32.gmra.mxu1 %vm345_vm0, %v920_v42 }
  0xdb   :  { %617 = vmatmul.msk.f32.gmra.mxu2 %vm345_vm0, %v920_v42  ;;  %621 = vmatmul.msk.f32.gmra.mxu3 %vm345_vm0, %v920_v42 }
  0xed   :  { %v333_v45 = vpop.permute.xlu2 %332 }
  0xf9   :  { %v328_v18 = vpop.permute.xlu1 %327 }
 0x104   :  { %v338_v49 = vpop.permute.xlu0 %337 }
 0x107   :  { %v998_v30 = vpop.permute.xlu1 %342 }
 0x109   :  { %v489_v41 = vpop.permute.xlu2 %488 }
 0x114   :  { %v499_v11 = vpop.permute.xlu2 %498 }
 0x118   :  { %v504_v29 = vpop.permute.xlu0 %503 }
 0x11e   :  { %v494_v46 = vpop.permute.xlu1 %493 }
 0x13f   :  { %v371_v20 = vpop.f32.mrf.mxu0  ;;  %v400_v15 = vpop.f32.mrf.mxu1 }
 0x140   :  { %v372_v50 = vadd.f32 %v371_v20, %v328_v18  ;;  %v401_v0 = vadd.f32 %v400_v15, %v328_v18 }
 0x142   :  { %v470_v10 = vmax.f32 %v372_v50, 0.0  ;;  %v471_v25 = vmax.f32 %v401_v0, 0.0 }
 0x144   :  { %v506_v17 = vmul.f32 %v489_v41, %v470_v10  ;;  %v507_v39 = vmul.f32 %v489_v41, %v471_v25 }
 0x146   :  { %v429_v61 = vpop.f32.mrf.mxu2  ;;  %v458_v62 = vpop.f32.mrf.mxu3 }
 0x147   :  { %v374_v55 = vpop.f32.mrf.mxu0  ;;  %v403_v22 = vpop.f32.mrf.mxu1  ;;  %v430_v32 = vadd.f32 %v429_v61, %v328_v18  ;;  %v459_v27 = vadd.f32 %v458_v62, %v328_v18 }
 0x148   :  { %v375_v14 = vadd.f32 %v374_v55, %v333_v45  ;;  %v404_v53 = vadd.f32 %v403_v22, %v333_v45 }
 0x149   :  { %v472_v34 = vmax.f32 %v430_v32, 0.0  ;;  %v473_v51 = vmax.f32 %v459_v27, 0.0 }
 0x14a   :  { %v474_v1 = vmax.f32 %v375_v14, 0.0  ;;  %v475_v48 = vmax.f32 %v404_v53, 0.0 }
 0x14b   :  { %v508_v18 = vmul.f32 %v489_v41, %v472_v34  ;;  %v509_v20 = vmul.f32 %v489_v41, %v473_v51 }
 0x14c   :  { %v510_v59 = vmul.f32 %v494_v46, %v474_v1  ;;  %v511_v13 = vmul.f32 %v494_v46, %v475_v48 }
 0x14e   :  { %v432_v63 = vpop.f32.mrf.mxu2  ;;  %v461_v56 = vpop.f32.mrf.mxu3  ;;  %v522_v6 = vadd.f32 %v510_v59, %v506_v17  ;;  %v531_v7 = vadd.f32 %v511_v13, %v507_v39 }
 0x14f   :  { %v377_v12 = vpop.f32.mrf.mxu0  ;;  %v406_v42 = vpop.f32.mrf.mxu1  ;;  %v433_v3 = vadd.f32 %v432_v63, %v333_v45  ;;  %v462_v54 = vadd.f32 %v461_v56, %v333_v45 }
 0x150   :  { %v378_v57 = vadd.f32 %v377_v12, %v338_v49  ;;  %v407_v9 = vadd.f32 %v406_v42, %v338_v49  ;;  %v561_v59 = vpop.permute.xlu1 %560 }
 0x151   :  { %v476_v52 = vmax.f32 %v433_v3, 0.0  ;;  %v477_v28 = vmax.f32 %v462_v54, 0.0 }
 0x152   :  { %v478_v31 = vmax.f32 %v378_v57, 0.0  ;;  %v479_v47 = vmax.f32 %v407_v9, 0.0 }
 0x153   :  { %v512_v44 = vmul.f32 %v494_v46, %v476_v52  ;;  %v513_v33 = vmul.f32 %v494_v46, %v477_v28  ;;  %v585_v28 = vlaneseq }
 0x154   :  { %v514_v5 = vmul.f32 %v499_v11, %v478_v31  ;;  %v515_v38 = vmul.f32 %v499_v11, %v479_v47 }
 0x155   :  { %v540_v63 = vadd.f32 %v512_v44, %v508_v18  ;;  %v549_v56 = vadd.f32 %v513_v33, %v509_v20  ;;  %vm587_vm4 = vcmp.lt.s32.totalorder %v585_v28, 512 }
 0x156   :  { %v435_v19 = vpop.f32.mrf.mxu2  ;;  %v464_v60 = vpop.f32.mrf.mxu3  ;;  %v523_v40 = vadd.f32 %v522_v6, %v514_v5  ;;  %v532_v16 = vadd.f32 %v531_v7, %v515_v38 }
 0x157   :  { %v436_v35 = vadd.f32 %v435_v19, %v338_v49  ;;  %v465_v21 = vadd.f32 %v464_v60, %v338_v49  ;;  %v380_v2 = vpop.f32.mrf.mxu0  ;;  %v409_v24 = vpop.f32.mrf.mxu1 }
 0x158   :  { %v381_v23 = vadd.f32 %v380_v2, %v998_v30  ;;  %v410_v43 = vadd.f32 %v409_v24, %v998_v30 }
 0x159   :  { %v480_v26 = vmax.f32 %v436_v35, 0.0  ;;  %v481_v58 = vmax.f32 %v465_v21, 0.0 }
 0x15a   :  { %v482_v37 = vmax.f32 %v381_v23, 0.0  ;;  %v483_v8 = vmax.f32 %v410_v43, 0.0 }
 0x15b   :  { %v516_v55 = vmul.f32 %v499_v11, %v480_v26  ;;  %v517_v22 = vmul.f32 %v499_v11, %v481_v58 }
 0x15c   :  { %v518_v36 = vmul.f32 %v504_v29, %v482_v37  ;;  %v519_v4 = vmul.f32 %v504_v29, %v483_v8 }
 0x15d   :  { %v541_v9 = vadd.f32 %v540_v63, %v516_v55  ;;  %v550_v41 = vadd.f32 %v549_v56, %v517_v22 }
 0x15e   :  { %v524_v15 = vadd.f32 %v523_v40, %v518_v36  ;;  %v533_v45 = vadd.f32 %v532_v16, %v519_v4  ;;  %v438_v61 = vpop.f32.mrf.mxu2  ;;  %v467_v62 = vpop.f32.mrf.mxu3 }
 0x15f   :  { %v439_v49 = vadd.f32 %v438_v61, %v998_v30  ;;  %v468_v50 = vadd.f32 %v467_v62, %v998_v30 }
 0x160   :  { %v525_v14 = vrot.slane %v524_v15, 4  ;;  %v534_v53 = vrot.slane %v533_v45, 4 }
 0x161   :  { %v484_v0 = vmax.f32 %v439_v49, 0.0  ;;  %v485_v12 = vmax.f32 %v468_v50, 0.0 }
 0x162   :  { %v526_v42 = vadd.f32 %v525_v14, %v524_v15  ;;  %v535_v57 = vadd.f32 %v534_v53, %v533_v45 }
 0x163   :  { %v520_v10 = vmul.f32 %v504_v29, %v484_v0  ;;  %v521_v1 = vmul.f32 %v504_v29, %v485_v12 }
 0x164   :  { %v527_v48 = vrot.slane %v526_v42, 2  ;;  %v536_v25 = vrot.slane %v535_v57, 2 }
 0x165   :  { %v542_v46 = vadd.f32 %v541_v9, %v520_v10  ;;  %v551_v31 = vadd.f32 %v550_v41, %v521_v1 }
 0x166   :  { %v537_v47 = vadd.f32 %v536_v25, %v535_v57  ;;  %v528_v30 = vadd.f32 %v527_v48, %v526_v42 }
 0x167   :  { %v543_v32 = vrot.slane %v542_v46, 4  ;;  %v552_v27 = vrot.slane %v551_v31, 4 }
 0x168   :  { %v538_v3 = vrot.slane %v537_v47, 1  ;;  %v529_v60 = vrot.slane %v528_v30, 1 }
 0x169   :  { %v544_v54 = vadd.f32 %v543_v32, %v542_v46  ;;  %v553_v11 = vadd.f32 %v552_v27, %v551_v31 }
 0x16a   :  { %v539_v17 = vadd.f32 %v538_v3, %v537_v47  ;;  %v530_v2 = vadd.f32 %v529_v60, %v528_v30 }
 0x16b   :  { %v545_v13 = vrot.slane %v544_v54, 2  ;;  %v554_v19 = vrot.slane %v553_v11, 2 }
 0x16c   :  { %v564_v21 = vadd.f32 %v561_v59, %v539_v17  ;;  %v563_v34 = vadd.f32 %v561_v59, %v530_v2 }
 0x16d   :  { %v546_v39 = vadd.f32 %v545_v13, %v544_v54  ;;  %v555_v35 = vadd.f32 %v554_v19, %v553_v11 }
 0x16e   :  { %v568_v43 = vand.u32 2147483647, %v564_v21  ;;  %v567_v37 = vand.u32 2147483647, %v563_v34 }
 0x16f   :  { %v547_v24 = vrot.slane %v546_v39, 1  ;;  %v556_v5 = vrot.slane %v555_v35, 1 }
 0x170   :  { %v575_v7 = vrot.slane %v568_v43, 7 }
 0x171   :  { %v548_v38 = vadd.f32 %v547_v24, %v546_v39  ;;  %v557_v23 = vadd.f32 %v556_v5, %v555_v35 }
 0x172   :  { %v579_v58 = vsel %vm578_vm1, %v567_v37, %v575_v7 }
 0x173   :  { %v565_v51 = vadd.f32 %v561_v59, %v548_v38  ;;  %v566_v52 = vadd.f32 %v561_v59, %v557_v23 }
 0x175   :  { %v569_v29 = vand.u32 2147483647, %v565_v51  ;;  %v570_v6 = vand.u32 2147483647, %v566_v52 }
 0x177   :  { %v576_v8 = vrot.slane %v569_v29, 6  ;;  %v577_v26 = vrot.slane %v570_v6, 5 }
 0x179   :  { %v581_v40 = vsel %vm580_vm2, %v576_v8, %v577_v26 }
 0x17a   :  { %v583_v16 = vsel %vm582_vm3, %v579_v58, %v581_v40 }
 0x17b   :  { %589 = vst.msk [vmem:[#allocation2] sm:$0xf] %vm587_vm4, %v583_v16 }
 0x17c   :  { %600 = dma.vmem_to_hbm [thread:$0]  %s596_s14, 64, %s598_s17, [#allocation3]  }
 0x17d   :  { %680 = dma.done.wait [#allocation3], 64  }
 0x17e   :  { %681 = vsyncadd [#allocation3], 4294967232 }
 0x17f   :  { %605 = vsyncpa [#allocation3], 1 }

</bundles_post_ra>
